<compile_context>
chip_gen: v6e
topology: v6e:2x2x1
jax: 0.10.0
libtpu: 0.0.40
codegen_flags: <defaults>
</compile_context>

<pallas_src>
import jax
import jax.numpy as jnp
import numpy as np
from jax import lax
from jax.experimental import pallas as pl
from jax.experimental.pallas import tpu as pltpu


def _make_fused_kernel(n_images):
    """Fused nearest-2x upsample + 3x3 SAME conv for one row tile of ALL images.

    x_ref : ((H+2)*N, WCp) f32   zero-row-padded, image-interleaved rows (resident)
    w_ref : (3*WCp, L)     bf16  merged [prev | cur | next] weight slab (resident)
    b_ref : (1, L)         f32   bias tiled over output lanes (resident)
    o_ref : (TH*N, L)      f32   TH original row-groups; lanes pack
                                 [even output row | odd output row]
    """

    def kernel(x_ref, w_ref, b_ref, o_ref):
        t = pl.program_id(0)
        trn = o_ref.shape[0]                      # TH * N rows in this tile
        base = t * trn                            # start row in the padded input
        if trn % 8 == 0:
            base = pl.multiple_of(base, 8)
        # Three overlapping row windows = the conv row taps (prev / cur / next
        # original row for every image).  Cast to bf16 for the MXU and merge the
        # taps into one K = 3*WCp contraction (single MXU pass set).
        x_prev = x_ref[pl.ds(base, trn), :].astype(jnp.bfloat16)
        x_cur = x_ref[pl.ds(base + n_images, trn), :].astype(jnp.bfloat16)
        x_next = x_ref[pl.ds(base + 2 * n_images, trn), :].astype(jnp.bfloat16)
        operand = jnp.concatenate([x_prev, x_cur, x_next], axis=1)  # (trn, 3*WCp)
        acc = jnp.dot(operand, w_ref[...], preferred_element_type=jnp.float32)
        acc = acc + b_ref[...]
        o_ref[...] = acc.astype(o_ref.dtype)

    return kernel


def _build_column_selector(W):
    """S[kw, b, j] = 1 iff upsampled column (b + kw - 1) is in range [0, 2W) and maps
    to original column j under nearest-2x upsampling.  Static, precomputed."""
    W2 = 2 * W
    S = np.zeros((3, W2, W), dtype=np.float32)
    for kw in range(3):
        for b in range(W2):
            src = b + kw - 1
            if 0 <= src < W2:
                S[kw, b, src // 2] = 1.0
    return jnp.asarray(S)


def _row_slab(wker, S, W, C):
    """wker: (Cout, Cin, 3) kernel-row weights over kw -> (W*C, 2W*C) matrix mapping
    a flattened original row to its contribution to one flattened upsampled+convolved
    output row (column upsample + zero pad + kw taps + channel mixing folded in)."""
    T = jnp.einsum('kbj,oik->jibo', S, wker)       # (W, Cin, 2W, Cout)
    return T.reshape(W * C, 2 * W * C)


def make_upsample_params(weight, bias, W, WCp):
    """Precompute the merged fused-kernel weight slab / bias from torch-layout params."""
    Cout, C = weight.shape[0], weight.shape[1]
    W2 = 2 * W
    L = 2 * W2 * Cout
    WC = W * C
    w = weight.astype(jnp.float32)                 # (Cout, Cin, 3, 3)
    S = _build_column_selector(W)

    T0 = _row_slab(w[:, :, 0, :], S, W, C)         # kernel row kh = 0
    T1 = _row_slab(w[:, :, 1, :], S, W, C)         # kh = 1
    T2 = _row_slab(w[:, :, 2, :], S, W, C)         # kh = 2
    zeros = jnp.zeros_like(T0)

    # Even output row 2h reads original rows (h-1: kh=0) and (h: kh=1 + kh=2);
    # odd output row 2h+1 reads (h: kh=0 + kh=1) and (h+1: kh=2).
    m_prev = jnp.concatenate([T0, zeros], axis=1)          # [even | odd] halves
    m_cur = jnp.concatenate([T1 + T2, T0 + T1], axis=1)
    m_next = jnp.concatenate([zeros, T2], axis=1)

    pad = WCp - WC
    slabs = [jnp.pad(m, ((0, pad), (0, 0))) for m in (m_prev, m_cur, m_next)]
    w_slab = jnp.concatenate(slabs, axis=0).astype(jnp.bfloat16)   # (3*WCp, L)

    b_lane = jnp.tile(bias.astype(jnp.float32), 2 * W2).reshape(1, L)   # f32 bias
    return w_slab, b_lane


def _pick_row_tile(H, N, target_rows):
    """Largest TH dividing H with TH*N <= target_rows (keeping TH*N a multiple of 8);
    fall back to TH = H (single tile covering the full row axis, always legal)."""
    if H * N <= target_rows:
        return H
    good = [d for d in range(1, H + 1)
            if H % d == 0 and d * N <= target_rows and (d * N) % 8 == 0]
    return max(good) if good else H


def upsample_forward(x_nchw, weight, bias, *, target_rows=256):
    """x_nchw: (N, C, H, W); weight: (Cout, Cin, 3, 3) torch layout; bias: (C,)."""
    N, C, H, W = x_nchw.shape
    H2, W2 = 2 * H, 2 * W
    WC = W * C
    WCp = max(128, ((WC + 127) // 128) * 128)      # lane-pad to a 128 multiple
    L = 2 * W2 * C                                 # lanes: [even out row | odd out row]

    # (N,C,H,W) -> (H, N, W*C): rows of all images interleaved, so the 3-row conv
    # halo of any row tile is a contiguous sublane window of the padded buffer.
    x_rows = jnp.transpose(x_nchw, (2, 0, 3, 1)).astype(jnp.float32).reshape(H, N, WC)
    x_rows = jnp.pad(x_rows, ((1, 1), (0, 0), (0, WCp - WC)))   # conv halo + lane pad
    x_flat = x_rows.reshape((H + 2) * N, WCp)

    w_slab, b_lane = make_upsample_params(weight, bias, W, WCp)

    TH = _pick_row_tile(H, N, target_rows)
    TRN = TH * N
    n_tiles = H // TH

    # Exact VMEM budget (worst case: 2 pipeline buffers on every BlockSpec'd array),
    # plus kernel temporaries and compiler-internal headroom.
    need = (2 * (H + 2) * N * WCp * 4              # f32 input rows
            + 2 * 3 * WCp * L * 2                  # bf16 weight slab
            + 2 * 128 * 4                          # bias row
            + 2 * TRN * L * 4                      # f32 output blocks
            + TRN * 3 * WCp * (4 + 2)              # windows + bf16 operand
            + TRN * L * 4                          # f32 accumulator
            + (2 << 20))
    try:
        phys = int(getattr(pltpu.get_tpu_info(), "vmem_capacity_bytes", 64 << 20))
    except Exception:
        phys = 64 << 20
    vmem_limit = int(min(max(need, 8 << 20), phys * 3 // 4))

    def call(use_buffered):
        def resident(shape):
            # Constant-index (resident) inputs: single buffer if supported.
            if use_buffered:
                return pl.BlockSpec(shape, lambda t: (0, 0),
                                    pipeline_mode=pl.Buffered(1))
            return pl.BlockSpec(shape, lambda t: (0, 0))

        return pl.pallas_call(
            _make_fused_kernel(N),
            out_shape=jax.ShapeDtypeStruct((H * N, L), jnp.float32),
            grid_spec=pltpu.PrefetchScalarGridSpec(
                num_scalar_prefetch=0,
                grid=(n_tiles,),
                in_specs=[
                    resident(((H + 2) * N, WCp)),   # padded rows, all images
                    resident((3 * WCp, L)),         # merged weight slab
                    resident((1, L)),               # bias
                ],
                out_specs=pl.BlockSpec((TRN, L), lambda t: (t, 0)),
            ),
            compiler_params=pltpu.CompilerParams(
                dimension_semantics=("parallel",),  # tiles are fully independent
                vmem_limit_bytes=vmem_limit,
            ),
        )(x_flat, w_slab, b_lane)

    try:
        out_flat = jax.block_until_ready(call(True))
    except Exception:
        # pl.Buffered(1) not supported on this JAX/Mosaic version: default buffering.
        out_flat = jax.block_until_ready(call(False))

    # (H*N, L) -> (N, C, 2H, 2W): free row-major reshapes + the single boundary
    # transpose required because the surrounding module is NCHW.
    out = out_flat.reshape(H, N, 2, W2, C)
    out = jnp.transpose(out, (1, 4, 0, 2, 3)).reshape(N, C, H2, W2)
    return out


def _reference(x_nchw, weight, bias):
    """Pure-JAX f32 reference: nearest-upsample 2x then SAME 3x3 conv."""
    x = jnp.transpose(x_nchw, (0, 2, 3, 1))
    x_up = jnp.repeat(jnp.repeat(x, 2, axis=1), 2, axis=2)
    w_hwio = jnp.transpose(weight, (2, 3, 1, 0)).astype(jnp.float32)
    out = lax.conv_general_dilated(
        x_up.astype(jnp.float32), w_hwio,
        window_strides=(1, 1), padding="SAME",
        dimension_numbers=("NHWC", "HWIO", "NHWC"))
    out = out + bias.reshape(1, 1, 1, -1)
    return jnp.transpose(out, (0, 3, 1, 2))


if __name__ == "__main__":
    key = jax.random.PRNGKey(0)
    k_x, k_w, k_b = jax.random.split(key, 3)

    N, C, H, W = 2, 4, 16, 16  # dim = C = 4
    x = jax.random.normal(k_x, (N, C, H, W), dtype=jnp.float32)

    # deterministic synthetic Conv2d(dim, dim, 3) parameters (kaiming-uniform-like scale)
    fan_in = C * 3 * 3
    bound = 1.0 / float(np.sqrt(fan_in))
    weight = jax.random.uniform(k_w, (C, C, 3, 3), minval=-bound, maxval=bound,
                                dtype=jnp.float32)
    bias = jax.random.uniform(k_b, (C,), minval=-bound, maxval=bound,
                              dtype=jnp.float32)

    out = upsample_forward(x, weight, bias)
    out = jax.block_until_ready(out)

    ref = _reference(x, weight, bias)
    assert out.shape == (N, C, 2 * H, 2 * W), out.shape
    max_err = float(jnp.max(jnp.abs(out - ref)))
    # bf16 MXU operands with f32 accumulation: loosened tolerance per review.
    assert jnp.allclose(out, ref, atol=5e-2, rtol=5e-2), max_err

    print("KERNEL_OK")
</pallas_src>

<mosaic_0001>
module attributes {stable_mosaic.version = 11 : i64} {
  func.func @kernel(%arg0: i32, %arg1: memref<36x128xf32, #tpu.memory_space<vmem>>, %arg2: memref<384x256xbf16, #tpu.memory_space<vmem>>, %arg3: memref<1x256xf32, #tpu.memory_space<vmem>>, %arg4: memref<32x256xf32, #tpu.memory_space<vmem>>) attributes {dimension_semantics = [#tpu.dimension_semantics<parallel>], iteration_bounds = array<i64: 1>, scalar_prefetch = 0 : i64, scratch_operands = 0 : i64, tpu.core_type = #tpu.core_type<tc>, window_params = [{pipeline_mode = #tpu.pipeline_mode<synchronous>, transform_indices = @transform_0, window_bounds = array<i64: 36, 128>}, {pipeline_mode = #tpu.pipeline_mode<synchronous>, transform_indices = @transform_1, window_bounds = array<i64: 384, 256>}, {pipeline_mode = #tpu.pipeline_mode<synchronous>, transform_indices = @transform_2, window_bounds = array<i64: 1, 256>}, {transform_indices = @transform_3, window_bounds = array<i64: 32, 256>}]} {
    %c32_i32 = arith.constant 32 : i32
    %0 = arith.muli %arg0, %c32_i32 : i32
    %1 = tpu.assume_multiple %0, 8 : i32
    %2 = arith.index_cast %1 : i32 to index
    %c0 = arith.constant 0 : index
    %3 = vector.load %arg1[%2, %c0] : memref<36x128xf32, #tpu.memory_space<vmem>>, vector<32x128xf32>
    %4 = arith.truncf %3 : vector<32x128xf32> to vector<32x128xbf16>
    %c2_i32 = arith.constant 2 : i32
    %5 = arith.addi %1, %c2_i32 : i32
    %6 = arith.index_cast %5 : i32 to index
    %c0_0 = arith.constant 0 : index
    %7 = vector.load %arg1[%6, %c0_0] : memref<36x128xf32, #tpu.memory_space<vmem>>, vector<32x128xf32>
    %8 = arith.truncf %7 : vector<32x128xf32> to vector<32x128xbf16>
    %c4_i32 = arith.constant 4 : i32
    %9 = arith.addi %1, %c4_i32 : i32
    %10 = arith.index_cast %9 : i32 to index
    %c0_1 = arith.constant 0 : index
    %11 = vector.load %arg1[%10, %c0_1] : memref<36x128xf32, #tpu.memory_space<vmem>>, vector<32x128xf32>
    %12 = arith.truncf %11 : vector<32x128xf32> to vector<32x128xbf16>
    %13 = tpu.concatenate %4, %8, %12 in 1 : vector<32x128xbf16>, vector<32x128xbf16>, vector<32x128xbf16> -> vector<32x384xbf16>
    %c0_2 = arith.constant 0 : index
    %c0_3 = arith.constant 0 : index
    %14 = vector.load %arg2[%c0_2, %c0_3] : memref<384x256xbf16, #tpu.memory_space<vmem>>, vector<384x256xbf16>
    %cst = arith.constant dense<0.000000e+00> : vector<32x256xf32>
    %15 = tpu.matmul %13, %14, %cst {dimension_numbers = #tpu.dot_dimension_numbers<[1], [0], [0], [1], [0, 0, 1, 1], [], []>} : vector<32x384xbf16>, vector<384x256xbf16>, vector<32x256xf32> -> vector<32x256xf32>
    %c0_4 = arith.constant 0 : index
    %c0_5 = arith.constant 0 : index
    %16 = vector.load %arg3[%c0_4, %c0_5] : memref<1x256xf32, #tpu.memory_space<vmem>>, vector<1x256xf32>
    %17 = vector.broadcast %16 : vector<1x256xf32> to vector<32x256xf32>
    %18 = arith.addf %15, %17 : vector<32x256xf32>
    %c0_6 = arith.constant 0 : index
    %c0_7 = arith.constant 0 : index
    %19 = vector.load %arg4[%c0_6, %c0_7] : memref<32x256xf32, #tpu.memory_space<vmem>>, vector<32x256xf32>
    tpu.vector_store %arg4[%c0_6, %c0_7], %18 {strides = array<i32>} : memref<32x256xf32, #tpu.memory_space<vmem>>, vector<32x256xf32>,
    return
  }
  func.func @transform_0(%arg0: i32) -> (i32, i32) {
    %c0_i32 = arith.constant 0 : i32
    %c0_i32_0 = arith.constant 0 : i32
    %c0_i32_1 = arith.constant 0 : i32
    return %c0_i32, %c0_i32_0 : i32, i32
  }
  func.func @transform_1(%arg0: i32) -> (i32, i32) {
    %c0_i32 = arith.constant 0 : i32
    %c0_i32_0 = arith.constant 0 : i32
    %c0_i32_1 = arith.constant 0 : i32
    return %c0_i32, %c0_i32_0 : i32, i32
  }
  func.func @transform_2(%arg0: i32) -> (i32, i32) {
    %c0_i32 = arith.constant 0 : i32
    %c0_i32_0 = arith.constant 0 : i32
    %c0_i32_1 = arith.constant 0 : i32
    return %c0_i32, %c0_i32_0 : i32, i32
  }
  func.func @transform_3(%arg0: i32) -> (i32, i32) {
    %c0_i32 = arith.constant 0 : i32
    %c0_i32_0 = arith.constant 0 : i32
    return %arg0, %c0_i32 : i32, i32
  }
}

module attributes {stable_mosaic.version = 11 : i64} {
  func.func @kernel(%arg0: i32, %arg1: memref<36x128xf32, #tpu.memory_space<vmem>>, %arg2: memref<384x256xbf16, #tpu.memory_space<vmem>>, %arg3: memref<1x256xf32, #tpu.memory_space<vmem>>, %arg4: memref<32x256xf32, #tpu.memory_space<vmem>>) attributes {dimension_semantics = [#tpu.dimension_semantics<parallel>], iteration_bounds = array<i64: 1>, scalar_prefetch = 0 : i64, scratch_operands = 0 : i64, tpu.core_type = #tpu.core_type<tc>, window_params = [{pipeline_mode = #tpu.pipeline_mode<synchronous>, transform_indices = @transform_0, window_bounds = array<i64: 36, 128>}, {pipeline_mode = #tpu.pipeline_mode<synchronous>, transform_indices = @transform_1, window_bounds = array<i64: 384, 256>}, {pipeline_mode = #tpu.pipeline_mode<synchronous>, transform_indices = @transform_2, window_bounds = array<i64: 1, 256>}, {transform_indices = @transform_3, window_bounds = array<i64: 32, 256>}]} {
    %c32_i32 = arith.constant 32 : i32
    %0 = arith.muli %arg0, %c32_i32 : i32
    %1 = tpu.assume_multiple %0, 8 : i32
    %2 = arith.index_cast %1 : i32 to index
    %c0 = arith.constant 0 : index
    %3 = vector.load %arg1[%2, %c0] : memref<36x128xf32, #tpu.memory_space<vmem>>, vector<32x128xf32>
    %4 = arith.truncf %3 : vector<32x128xf32> to vector<32x128xbf16>
    %c2_i32 = arith.constant 2 : i32
    %5 = arith.addi %1, %c2_i32 : i32
    %6 = arith.index_cast %5 : i32 to index
    %c0_0 = arith.constant 0 : index
    %7 = vector.load %arg1[%6, %c0_0] : memref<36x128xf32, #tpu.memory_space<vmem>>, vector<32x128xf32>
    %8 = arith.truncf %7 : vector<32x128xf32> to vector<32x128xbf16>
    %c4_i32 = arith.constant 4 : i32
    %9 = arith.addi %1, %c4_i32 : i32
    %10 = arith.index_cast %9 : i32 to index
    %c0_1 = arith.constant 0 : index
    %11 = vector.load %arg1[%10, %c0_1] : memref<36x128xf32, #tpu.memory_space<vmem>>, vector<32x128xf32>
    %12 = arith.truncf %11 : vector<32x128xf32> to vector<32x128xbf16>
    %13 = tpu.concatenate %4, %8, %12 in 1 : vector<32x128xbf16>, vector<32x128xbf16>, vector<32x128xbf16> -> vector<32x384xbf16>
    %c0_2 = arith.constant 0 : index
    %c0_3 = arith.constant 0 : index
    %14 = vector.load %arg2[%c0_2, %c0_3] : memref<384x256xbf16, #tpu.memory_space<vmem>>, vector<384x256xbf16>
    %cst = arith.constant dense<0.000000e+00> : vector<32x256xf32>
    %15 = tpu.matmul %13, %14, %cst {dimension_numbers = #tpu.dot_dimension_numbers<[1], [0], [0], [1], [0, 0, 1, 1], [], []>} : vector<32x384xbf16>, vector<384x256xbf16>, vector<32x256xf32> -> vector<32x256xf32>
    %c0_4 = arith.constant 0 : index
    %c0_5 = arith.constant 0 : index
    %16 = vector.load %arg3[%c0_4, %c0_5] : memref<1x256xf32, #tpu.memory_space<vmem>>, vector<1x256xf32>
    %17 = vector.broadcast %16 : vector<1x256xf32> to vector<32x256xf32>
    %18 = arith.addf %15, %17 : vector<32x256xf32>
    %c0_6 = arith.constant 0 : index
    %c0_7 = arith.constant 0 : index
    %19 = vector.load %arg4[%c0_6, %c0_7] : memref<32x256xf32, #tpu.memory_space<vmem>>, vector<32x256xf32>
    tpu.vector_store %arg4[%c0_6, %c0_7], %18 {strides = array<i32>} : memref<32x256xf32, #tpu.memory_space<vmem>>, vector<32x256xf32>,
    return
  }
  func.func @transform_0(%arg0: i32) -> (i32, i32) {
    %c0_i32 = arith.constant 0 : i32
    %c0_i32_0 = arith.constant 0 : i32
    %c0_i32_1 = arith.constant 0 : i32
    return %c0_i32, %c0_i32_0 : i32, i32
  }
  func.func @transform_1(%arg0: i32) -> (i32, i32) {
    %c0_i32 = arith.constant 0 : i32
    %c0_i32_0 = arith.constant 0 : i32
    %c0_i32_1 = arith.constant 0 : i32
    return %c0_i32, %c0_i32_0 : i32, i32
  }
  func.func @transform_2(%arg0: i32) -> (i32, i32) {
    %c0_i32 = arith.constant 0 : i32
    %c0_i32_0 = arith.constant 0 : i32
    %c0_i32_1 = arith.constant 0 : i32
    return %c0_i32, %c0_i32_0 : i32, i32
  }
  func.func @transform_3(%arg0: i32) -> (i32, i32) {
    %c0_i32 = arith.constant 0 : i32
    %c0_i32_0 = arith.constant 0 : i32
    return %arg0, %c0_i32 : i32, i32
  }
}

</mosaic_0001>

<bundles_post_ra>
// kernel: tpu_custom_call.1
= control target key start
LH: loop header
LB: loop body
LE: loop exit
PB: predicated region body
PF: predicated region fallthrough
CT: control target
= control target key end

     0   :  { %8 = vsyncpa [#allocation3], 0  ;;  %s738_s0 = inlined_call_operand.hbm [shape: f32[36,128], index: 0, kind: input, shape index: {}]   ;;  %s739_s1 = inlined_call_operand.hbm [shape: bf16[384,256], index: 1, kind: input, shape index: {}]   ;;  %s740_s2 = inlined_call_operand.vmem [shape: f32[1,256], index: 2, kind: input, shape index: {}]   ;;  %s741_s3 = inlined_call_operand.hbm [shape: f32[32,256], index: 3, kind: output, shape index: {}]  }
   0x1   :  { %9 = vsyncpa [#allocation6], 0 }
   0x2   :  { %10 = vsyncpa [#allocation4], 0  ;;  %s696_s12 = smov [#allocation2]  }
   0x3   :  { %s16_s13 = sshll.u32 %s696_s12, 4  ;;  %s17_s13 = int_to_ptr.vmem [resolvable:$true] %s16_s13 }
   0x4   :  { %s638_s14 = scalar_lea.vmem %s17_s13, 640  ;;  %p643_p1 = scmp.lt.s32.totalorder %s17_s13, %s17_s13 }
   0x5   :  { %p639_p0 = scmp.ne.s32.totalorder %s17_s13, %s638_s14  ;;  %p644_p2 = scmp.lt.s32.totalorder %s638_s14, %s638_s14 }
   0x7   :  { %p645_p3 = por %p644_p2, %p643_p1 }
   0x9   :  { %p646_p4 = pnand %p645_p3, %p639_p0 }
   0xb   :  { %649 = shalt.err (!%p646_p4)
}
   0xc   :  { %s697_s15 = smov 128   ;;  %s698_s16 = smov 8  }
   0xd   :  { %22 = dma.hbm_to_vmem [thread:$0]  %s738_s0, 640, %s17_s13, [#allocation3], %s697_s15, %s697_s15, %s698_s16  }
   0xe   :  { %s699_s19 = smov [#allocation5]  }
   0xf   :  { %s28_s20 = sshll.u32 %s699_s19, 4  ;;  %s29_s20 = int_to_ptr.vmem [resolvable:$true] %s28_s20 }
  0x10   :  { %s658_s21 = scalar_lea.vmem %s29_s20, 6144  ;;  %p663_p6 = scmp.lt.s32.totalorder %s29_s20, %s29_s20 }
  0x11   :  { %p659_p5 = scmp.ne.s32.totalorder %s29_s20, %s658_s21  ;;  %p664_p7 = scmp.lt.s32.totalorder %s658_s21, %s658_s21 }
  0x13   :  { %p665_p8 = por %p664_p7, %p663_p6 }
  0x15   :  { %p666_p9 = pnand %p665_p8, %p659_p5 }
  0x17   :  { %669 = shalt.err (!%p666_p9)
}
  0x18   :  { %34 = dma.hbm_to_vmem [thread:$0]  %s739_s1, 6144, %s29_s20, [#allocation6], %s697_s15, %s697_s15, %s698_s16  }
  0x19   :  { %690 = dma.done.wait [#allocation3], 640  }
  0x1a   :  { %691 = vsyncadd [#allocation3], 4294966656 }
  0x1b   :  { %692 = dma.done.wait [#allocation6], 6144  }
  0x1c   :  { %693 = vsyncadd [#allocation6], 4294961152  ;;  %v700_v0 = vmov 0   ;;  %v558_v1 = vld [vmem:[#allocation5 + $0x74] ss:$8 sps:$4 sm:$0xff]   ;;  %v55_v34 = vld [vmem:[#allocation2 + $0xa] sm:$0xff] }
  0x1d   :  { %453 = vmatprep.mubr.bf16.mxu1 %v700_v0  ;;  %v560_v2 = vld [vmem:[#allocation5 + $0x70] ss:$8 sps:$4 sm:$0xff]   ;;  %368 = vmatprep.subr.bf16.mxu0 %v558_v1  ;;  %v561_v3 = vld [vmem:[#allocation5 + $0x64] ss:$8 sps:$4 sm:$0xff]   ;;  %v563_v4 = vld [vmem:[#allocation5 + $0x60] ss:$8 sps:$4 sm:$0xff]  }
  0x1e   :  { %369 = vmatpush1.bf16.msra.mxu0 %v560_v2  ;;  %v564_v5 = vld [vmem:[#allocation5 + $0x54] ss:$8 sps:$4 sm:$0xff]   ;;  %v566_v6 = vld [vmem:[#allocation5 + $0x50] ss:$8 sps:$4 sm:$0xff]   ;;  %v567_v7 = vld [vmem:[#allocation5 + $0x44] ss:$8 sps:$4 sm:$0xff]  }
  0x1f   :  { %370 = vmatprep.subr.bf16.mxu0 %v561_v3  ;;  %v569_v8 = vld [vmem:[#allocation5 + $0x40] ss:$8 sps:$4 sm:$0xff]   ;;  %v581_v9 = vld [vmem:[#allocation5 + $0x174] ss:$8 sps:$4 sm:$0xff]   ;;  %v584_v10 = vld [vmem:[#allocation5 + $0x170] ss:$8 sps:$4 sm:$0xff]   ;;  %v118_v3 = vlaneseq }
  0x20   :  { %v570_v11 = vld [vmem:[#allocation5 + $0x34] ss:$8 sps:$4 sm:$0xff]   ;;  %421 = vmatprep.subr.bf16.mxu1 %v581_v9  ;;  %v587_v12 = vld [vmem:[#allocation5 + $0x164] ss:$8 sps:$4 sm:$0xff]   ;;  %v590_v13 = vld [vmem:[#allocation5 + $0x160] ss:$8 sps:$4 sm:$0xff]  }
  0x21   :  { %422 = vmatpush1.bf16.msra.mxu1 %v584_v10  ;;  %v572_v14 = vld [vmem:[#allocation5 + $0x30] ss:$8 sps:$4 sm:$0xff]   ;;  %v573_v15 = vld [vmem:[#allocation5 + $0x24] ss:$8 sps:$4 sm:$0xff]   ;;  %v593_v16 = vld [vmem:[#allocation5 + $0x154] ss:$8 sps:$4 sm:$0xff]  }
  0x22   :  { %371 = vmatpush1.bf16.msra.mxu0 %v563_v4  ;;  %423 = vmatprep.subr.bf16.mxu1 %v587_v12  ;;  %v596_v17 = vld [vmem:[#allocation5 + $0x150] ss:$8 sps:$4 sm:$0xff]   ;;  %v575_v18 = vld [vmem:[#allocation5 + $0x20] ss:$8 sps:$4 sm:$0xff]   ;;  %v599_v19 = vld [vmem:[#allocation5 + $0x144] ss:$8 sps:$4 sm:$0xff]  }
  0x23   :  { %372 = vmatprep.subr.bf16.mxu0 %v564_v5  ;;  %v576_v20 = vld [vmem:[#allocation5 + $0x14] ss:$8 sps:$4 sm:$0xff]   ;;  %v578_v21 = vld [vmem:[#allocation5 + $0x10] ss:$8 sps:$4 sm:$0xff]   ;;  %v602_v22 = vld [vmem:[#allocation5 + $0x140] ss:$8 sps:$4 sm:$0xff]  }
  0x24   :  { %v605_v23 = vld [vmem:[#allocation5 + $0x134] ss:$8 sps:$4 sm:$0xff]   ;;  %v579_v24 = vld [vmem:[#allocation5 + $0x4] ss:$8 sps:$4 sm:$0xff]   ;;  %v608_v25 = vld [vmem:[#allocation5 + $0x130] ss:$8 sps:$4 sm:$0xff]  }
  0x25   :  { %424 = vmatpush1.bf16.msra.mxu1 %v590_v13  ;;  %v583_v26 = vld [vmem:[#allocation5] ss:$8 sps:$4 sm:$0xff]   ;;  %v611_v27 = vld [vmem:[#allocation5 + $0x124] ss:$8 sps:$4 sm:$0xff]   ;;  %v585_v28 = vld [vmem:[#allocation5 + $0xf4] ss:$8 sps:$4 sm:$0xff]  }
  0x26   :  { %373 = vmatpush1.bf16.msra.mxu0 %v566_v6  ;;  %425 = vmatprep.subr.bf16.mxu1 %v593_v16  ;;  %v614_v29 = vld [vmem:[#allocation5 + $0x120] ss:$8 sps:$4 sm:$0xff]   ;;  %v589_v30 = vld [vmem:[#allocation5 + $0xf0] ss:$8 sps:$4 sm:$0xff]   ;;  %v617_v31 = vld [vmem:[#allocation5 + $0x114] ss:$8 sps:$4 sm:$0xff]  }
  0x27   :  { %374 = vmatprep.subr.bf16.mxu0 %v567_v7  ;;  %v591_v32 = vld [vmem:[#allocation5 + $0xe4] ss:$8 sps:$4 sm:$0xff]   ;;  %v54_v33 = vld [vmem:[#allocation2 + $0x2] sm:$0xff]  ;;  %v57_v61 = vld [vmem:[#allocation2 + $0x1a] sm:$0xff]  ;;  %v119_v5 = vshrl.u32 %v118_v3, 7 }
  0x28   :  { %v620_v35 = vld [vmem:[#allocation5 + $0x110] ss:$8 sps:$4 sm:$0xff]   ;;  %v58_v36 = vpack.c.bf16 %v55_v34, %v54_v33  ;;  %v595_v37 = vld [vmem:[#allocation5 + $0xe0] ss:$8 sps:$4 sm:$0xff]   ;;  %v623_v38 = vld [vmem:[#allocation5 + $0x104] ss:$8 sps:$4 sm:$0xff]  }
  0x29   :  { %426 = vmatpush1.bf16.msra.mxu1 %v596_v17  ;;  %v597_v39 = vld [vmem:[#allocation5 + $0xd4] ss:$8 sps:$4 sm:$0xff]   ;;  %v626_v40 = vld [vmem:[#allocation5 + $0x100] ss:$8 sps:$4 sm:$0xff]   ;;  %v601_v43 = vld [vmem:[#allocation5 + $0xd0] ss:$8 sps:$4 sm:$0xff]  }
  0x2a   :  { %375 = vmatpush1.bf16.msra.mxu0 %v569_v8  ;;  %427 = vmatprep.subr.bf16.mxu1 %v599_v19  ;;  %v62_v41 = vld [vmem:[#allocation2 + $0x4] sm:$0xff]  ;;  %v63_v42 = vld [vmem:[#allocation2 + $0xc] sm:$0xff]  ;;  %v64_v48 = vld [vmem:[#allocation2 + $0x14] sm:$0xff]  ;;  %v120_v7 = vsub.s32 0, %v119_v5  ;;  %v124_v9 = vsub.s32 1, %v119_v5 }
  0x2b   :  { %376 = vmatprep.subr.bf16.mxu0 %v570_v11  ;;  %400 = vmatprep.mubr.bf16.mxu0 %v58_v36  ;;  %v603_v44 = vld [vmem:[#allocation5 + $0xc4] ss:$8 sps:$4 sm:$0xff]   ;;  %v66_v45 = vpack.c.bf16 %v63_v42, %v62_v41  ;;  %v607_v46 = vld [vmem:[#allocation5 + $0xc0] ss:$8 sps:$4 sm:$0xff]   ;;  %v609_v47 = vld [vmem:[#allocation5 + $0xb4] ss:$8 sps:$4 sm:$0xff]  }
  0x2c   :  { %v65_v49 = vld [vmem:[#allocation2 + $0x1c] sm:$0xff]  ;;  %v615_v51 = vld [vmem:[#allocation5 + $0xa4] ss:$8 sps:$4 sm:$0xff]   ;;  %v619_v53 = vld [vmem:[#allocation5 + $0xa0] ss:$8 sps:$4 sm:$0xff]  }
  0x2d   :  { %428 = vmatpush1.bf16.msra.mxu1 %v602_v22  ;;  %v613_v50 = vld [vmem:[#allocation5 + $0xb0] ss:$8 sps:$4 sm:$0xff]   ;;  %v67_v52 = vpack.c.bf16 %v65_v49, %v64_v48  ;;  %v621_v54 = vld [vmem:[#allocation5 + $0x94] ss:$8 sps:$4 sm:$0xff]   ;;  %v627_v56 = vld [vmem:[#allocation5 + $0x84] ss:$8 sps:$4 sm:$0xff]  }
  0x2e   :  { %377 = vmatpush1.bf16.msra.mxu0 %v572_v14  ;;  %429 = vmatprep.subr.bf16.mxu1 %v605_v23  ;;  %v625_v55 = vld [vmem:[#allocation5 + $0x90] ss:$8 sps:$4 sm:$0xff]   ;;  %v629_v57 = vld [vmem:[#allocation5 + $0x80] ss:$8 sps:$4 sm:$0xff]  }
  0x2f   :  { %378 = vmatprep.subr.bf16.mxu0 %v573_v15  ;;  %v46_v58 = vld [vmem:[#allocation2] sm:$0xff]  ;;  %v47_v59 = vld [vmem:[#allocation2 + $0x8] sm:$0xff]  ;;  %v56_v60 = vld [vmem:[#allocation2 + $0x12] sm:$0xff] }
  0x30   :  { %v50_v62 = vpack.c.bf16 %v47_v59, %v46_v58  ;;  %v59_v63 = vpack.c.bf16 %v57_v61, %v56_v60  ;;  %v49_v1 = vld [vmem:[#allocation2 + $0x18] sm:$0xff]  ;;  %v116_v8 = vld [vmem:[%s740_s2] sm:$0x3]  ;;  %s701_s2 = smov [#allocation7]  }
  0x31   :  { %430 = vmatpush1.bf16.msra.mxu1 %v608_v25  ;;  %v121_v11 = vrot.slane %v116_v8, %v120_v7  ;;  %v125_v12 = vrot.slane %v116_v8, %v124_v9  ;;  %s487_s24 = sshll.u32 %s701_s2, 4  ;;  %s488_s24 = int_to_ptr.vmem [resolvable:$true] %s487_s24 }
  0x32   :  { %379 = vmatpush1.bf16.msra.mxu0 %v575_v18  ;;  %431 = vmatprep.subr.bf16.mxu1 %v611_v27  ;;  %s670_s25 = scalar_lea.vmem %s488_s24, 1024  ;;  %p675_p11 = scmp.lt.s32.totalorder %s488_s24, %s488_s24 }
  0x33   :  { %380 = vmatprep.subr.bf16.mxu0 %v576_v20  ;;  %p671_p10 = scmp.ne.s32.totalorder %s488_s24, %s670_s25  ;;  %p676_p12 = scmp.lt.s32.totalorder %s670_s25, %s670_s25 }
  0x35   :  { %432 = vmatpush1.bf16.msra.mxu1 %v614_v29  ;;  %p677_p13 = por %p676_p12, %p675_p11 }
  0x36   :  { %381 = vmatpush1.bf16.msra.mxu0 %v578_v21  ;;  %433 = vmatprep.subr.bf16.mxu1 %v617_v31 }
  0x37   :  { %382 = vmatprep.subr.bf16.mxu0 %v579_v24  ;;  %p678_p0 = pnand %p677_p13, %p671_p10 }
  0x39   :  { %434 = vmatpush1.bf16.msra.mxu1 %v620_v35 }
  0x3a   :  { %383 = vmatpush1.bf16.msra.mxu0 %v583_v26  ;;  %435 = vmatprep.subr.bf16.mxu1 %v623_v38 }
  0x3b   :  { %384 = vmatprep.subr.bf16.mxu0 %v585_v28 }
  0x3d   :  { %436 = vmatpush1.bf16.msra.mxu1 %v626_v40 }
  0x3e   :  { %385 = vmatpush2.bf16.msra.mxu0 %v589_v30 }
  0x3f   :  { %386 = vmatprep.subr.bf16.mxu0 %v591_v32 }
  0x40   :  { %454 = vmatmul.mubr.bf16.vlgmr.msra.gmra.mxu1 %v66_v45 }
  0x41   :  { %463 = vmatprep.mubr.bf16.mxu1 %v700_v0  ;;  %v48_v0 = vld [vmem:[#allocation2 + $0x10] sm:$0xff] }
  0x42   :  { %387 = vmatpush2.bf16.msra.mxu0 %v595_v37  ;;  %v51_v2 = vpack.c.bf16 %v49_v1, %v48_v0 }
  0x43   :  { %388 = vmatprep.subr.bf16.mxu0 %v597_v39 }
  0x46   :  { %389 = vmatpush2.bf16.msra.mxu0 %v601_v43 }
  0x47   :  { %390 = vmatprep.subr.bf16.mxu0 %v603_v44 }
  0x48   :  { %464 = vmatmul.mubr.bf16.gmra.mxu1 %v67_v52 }
  0x4a   :  { %391 = vmatpush2.bf16.msra.mxu0 %v607_v46 }
  0x4b   :  { %392 = vmatprep.subr.bf16.mxu0 %v609_v47 }
  0x4e   :  { %393 = vmatpush2.bf16.msra.mxu0 %v613_v50 }
  0x4f   :  { %394 = vmatprep.subr.bf16.mxu0 %v615_v51 }
  0x52   :  { %395 = vmatpush2.bf16.msra.mxu0 %v619_v53 }
  0x53   :  { %396 = vmatprep.subr.bf16.mxu0 %v621_v54 }
  0x56   :  { %397 = vmatpush2.bf16.msra.mxu0 %v625_v55 }
  0x57   :  { %398 = vmatprep.subr.bf16.mxu0 %v627_v56 }
  0x5a   :  { %399 = vmatpush2.bf16.msra.mxu0 %v629_v57 }
  0x5d   :  { %401 = vmatmul.mubr.bf16.vlgmr.msra.gmra.mxu0 %v50_v62 }
  0x5e   :  { %410 = vmatprep.mubr.bf16.mxu0 %v59_v63 }
  0x65   :  { %411 = vmatmul.mubr.bf16.gmra.mxu0 %v51_v2 }
 0x100   :  { %v455_v4 = vpop.f32.mrf.mxu1 }
 0x102   :  { %v457_v6 = vpop.f32.mrf.mxu1 }
 0x104   :  { %v459_v10 = vpop.f32.mrf.mxu1 }
 0x106   :  { %v461_v14 = vpop.f32.mrf.mxu1 }
 0x108   :  { %v465_v20 = vpop.f32.mrf.mxu1 }
 0x10a   :  { %v467_v26 = vpop.f32.mrf.mxu1 }
 0x10c   :  { %v469_v33 = vpop.f32.mrf.mxu1 }
 0x10e   :  { %v471_v40 = vpop.f32.mrf.mxu1 }
 0x11d   :  { %v402_v13 = vpop.f32.mrf.mxu0 }
 0x11e   :  { %v403_v15 = vadd.f32 %v402_v13, %v121_v11 }
 0x11f   :  { %v404_v16 = vpop.f32.mrf.mxu0 }
 0x120   :  { %v456_v17 = vadd.f32 %v455_v4, %v403_v15  ;;  %v405_v18 = vadd.f32 %v404_v16, %v125_v12 }
 0x121   :  { %v406_v19 = vpop.f32.mrf.mxu0 }
 0x122   :  { %474 = vst [vmem:[#allocation7] sm:$0xff] %v456_v17  ;;  %v458_v21 = vadd.f32 %v457_v6, %v405_v18  ;;  %v407_v22 = vadd.f32 %v406_v19, %v121_v11 }
 0x123   :  { %v408_v23 = vpop.f32.mrf.mxu0 }
 0x124   :  { %475 = vst [vmem:[#allocation7 + $0x8] sm:$0xff] %v458_v21  ;;  %v460_v24 = vadd.f32 %v459_v10, %v407_v22  ;;  %v409_v25 = vadd.f32 %v408_v23, %v125_v12 }
 0x125   :  { %v412_v27 = vpop.f32.mrf.mxu0 }
 0x126   :  { %476 = vst [vmem:[#allocation7 + $0x10] sm:$0xff] %v460_v24  ;;  %v462_v28 = vadd.f32 %v461_v14, %v409_v25  ;;  %v413_v29 = vadd.f32 %v412_v27, %v121_v11 }
 0x127   :  { %v414_v30 = vpop.f32.mrf.mxu0 }
 0x128   :  { %477 = vst [vmem:[#allocation7 + $0x18] sm:$0xff] %v462_v28  ;;  %v466_v31 = vadd.f32 %v465_v20, %v413_v29  ;;  %v415_v32 = vadd.f32 %v414_v30, %v125_v12 }
 0x129   :  { %v416_v34 = vpop.f32.mrf.mxu0 }
 0x12a   :  { %478 = vst [vmem:[#allocation7 + $0x20] sm:$0xff] %v466_v31  ;;  %v468_v35 = vadd.f32 %v467_v26, %v415_v32  ;;  %v417_v36 = vadd.f32 %v416_v34, %v121_v11 }
 0x12b   :  { %v418_v37 = vpop.f32.mrf.mxu0 }
 0x12c   :  { %479 = vst [vmem:[#allocation7 + $0x28] sm:$0xff] %v468_v35  ;;  %v470_v38 = vadd.f32 %v469_v33, %v417_v36  ;;  %v419_v39 = vadd.f32 %v418_v37, %v125_v12 }
 0x12e   :  { %480 = vst [vmem:[#allocation7 + $0x30] sm:$0xff] %v470_v38  ;;  %v472_v41 = vadd.f32 %v471_v40, %v419_v39 }
 0x130   :  { %481 = vst [vmem:[#allocation7 + $0x38] sm:$0xff] %v472_v41 }
 0x131   :  { %681 = shalt.err (!%p678_p0)
}
 0x132   :  { %s702_s26 = smov 256   ;;  %s703_s27 = smov 16  }
 0x133   :  { %493 = dma.vmem_to_hbm [thread:$0]  %s488_s24, 1024, %s741_s3, [#allocation4], %s702_s26, %s702_s26, %s703_s27  }
 0x134   :  { %694 = dma.done.wait [#allocation4], 1024  }
 0x135   :  { %695 = vsyncadd [#allocation4], 4294966272 }
 0x136   :  { %497 = vsyncpa [#allocation3], 1 }
 0x137   :  { %498 = vsyncpa [#allocation6], 1 }
 0x138   :  { %499 = vsyncpa [#allocation4], 1 }

// kernel: tpu_custom_call.1
= control target key start
LH: loop header
LB: loop body
LE: loop exit
PB: predicated region body
PF: predicated region fallthrough
CT: control target
= control target key end

     0   :  { %8 = vsyncpa [#allocation3], 0  ;;  %s738_s0 = inlined_call_operand.hbm [shape: f32[36,128], index: 0, kind: input, shape index: {}]   ;;  %s739_s1 = inlined_call_operand.hbm [shape: bf16[384,256], index: 1, kind: input, shape index: {}]   ;;  %s740_s2 = inlined_call_operand.vmem [shape: f32[1,256], index: 2, kind: input, shape index: {}]   ;;  %s741_s3 = inlined_call_operand.hbm [shape: f32[32,256], index: 3, kind: output, shape index: {}]  }
   0x1   :  { %9 = vsyncpa [#allocation6], 0 }
   0x2   :  { %10 = vsyncpa [#allocation4], 0  ;;  %s696_s12 = smov [#allocation2]  }
   0x3   :  { %s16_s13 = sshll.u32 %s696_s12, 4  ;;  %s17_s13 = int_to_ptr.vmem [resolvable:$true] %s16_s13 }
   0x4   :  { %s638_s14 = scalar_lea.vmem %s17_s13, 640  ;;  %p643_p1 = scmp.lt.s32.totalorder %s17_s13, %s17_s13 }
   0x5   :  { %p639_p0 = scmp.ne.s32.totalorder %s17_s13, %s638_s14  ;;  %p644_p2 = scmp.lt.s32.totalorder %s638_s14, %s638_s14 }
   0x7   :  { %p645_p3 = por %p644_p2, %p643_p1 }
   0x9   :  { %p646_p4 = pnand %p645_p3, %p639_p0 }
   0xb   :  { %649 = shalt.err (!%p646_p4)
}
   0xc   :  { %s697_s15 = smov 128   ;;  %s698_s16 = smov 8  }
   0xd   :  { %22 = dma.hbm_to_vmem [thread:$0]  %s738_s0, 640, %s17_s13, [#allocation3], %s697_s15, %s697_s15, %s698_s16  }
   0xe   :  { %s699_s19 = smov [#allocation5]  }
   0xf   :  { %s28_s20 = sshll.u32 %s699_s19, 4  ;;  %s29_s20 = int_to_ptr.vmem [resolvable:$true] %s28_s20 }
  0x10   :  { %s658_s21 = scalar_lea.vmem %s29_s20, 6144  ;;  %p663_p6 = scmp.lt.s32.totalorder %s29_s20, %s29_s20 }
  0x11   :  { %p659_p5 = scmp.ne.s32.totalorder %s29_s20, %s658_s21  ;;  %p664_p7 = scmp.lt.s32.totalorder %s658_s21, %s658_s21 }
  0x13   :  { %p665_p8 = por %p664_p7, %p663_p6 }
  0x15   :  { %p666_p9 = pnand %p665_p8, %p659_p5 }
  0x17   :  { %669 = shalt.err (!%p666_p9)
}
  0x18   :  { %34 = dma.hbm_to_vmem [thread:$0]  %s739_s1, 6144, %s29_s20, [#allocation6], %s697_s15, %s697_s15, %s698_s16  }
  0x19   :  { %690 = dma.done.wait [#allocation3], 640  }
  0x1a   :  { %691 = vsyncadd [#allocation3], 4294966656 }
  0x1b   :  { %692 = dma.done.wait [#allocation6], 6144  }
  0x1c   :  { %693 = vsyncadd [#allocation6], 4294961152  ;;  %v700_v0 = vmov 0   ;;  %v558_v1 = vld [vmem:[#allocation5 + $0x74] ss:$8 sps:$4 sm:$0xff]   ;;  %v55_v34 = vld [vmem:[#allocation2 + $0xa] sm:$0xff] }
  0x1d   :  { %453 = vmatprep.mubr.bf16.mxu1 %v700_v0  ;;  %v560_v2 = vld [vmem:[#allocation5 + $0x70] ss:$8 sps:$4 sm:$0xff]   ;;  %368 = vmatprep.subr.bf16.mxu0 %v558_v1  ;;  %v561_v3 = vld [vmem:[#allocation5 + $0x64] ss:$8 sps:$4 sm:$0xff]   ;;  %v563_v4 = vld [vmem:[#allocation5 + $0x60] ss:$8 sps:$4 sm:$0xff]  }
  0x1e   :  { %369 = vmatpush1.bf16.msra.mxu0 %v560_v2  ;;  %v564_v5 = vld [vmem:[#allocation5 + $0x54] ss:$8 sps:$4 sm:$0xff]   ;;  %v566_v6 = vld [vmem:[#allocation5 + $0x50] ss:$8 sps:$4 sm:$0xff]   ;;  %v567_v7 = vld [vmem:[#allocation5 + $0x44] ss:$8 sps:$4 sm:$0xff]  }
  0x1f   :  { %370 = vmatprep.subr.bf16.mxu0 %v561_v3  ;;  %v569_v8 = vld [vmem:[#allocation5 + $0x40] ss:$8 sps:$4 sm:$0xff]   ;;  %v581_v9 = vld [vmem:[#allocation5 + $0x174] ss:$8 sps:$4 sm:$0xff]   ;;  %v584_v10 = vld [vmem:[#allocation5 + $0x170] ss:$8 sps:$4 sm:$0xff]   ;;  %v118_v3 = vlaneseq }
  0x20   :  { %v570_v11 = vld [vmem:[#allocation5 + $0x34] ss:$8 sps:$4 sm:$0xff]   ;;  %421 = vmatprep.subr.bf16.mxu1 %v581_v9  ;;  %v587_v12 = vld [vmem:[#allocation5 + $0x164] ss:$8 sps:$4 sm:$0xff]   ;;  %v590_v13 = vld [vmem:[#allocation5 + $0x160] ss:$8 sps:$4 sm:$0xff]  }
  0x21   :  { %422 = vmatpush1.bf16.msra.mxu1 %v584_v10  ;;  %v572_v14 = vld [vmem:[#allocation5 + $0x30] ss:$8 sps:$4 sm:$0xff]   ;;  %v573_v15 = vld [vmem:[#allocation5 + $0x24] ss:$8 sps:$4 sm:$0xff]   ;;  %v593_v16 = vld [vmem:[#allocation5 + $0x154] ss:$8 sps:$4 sm:$0xff]  }
  0x22   :  { %371 = vmatpush1.bf16.msra.mxu0 %v563_v4  ;;  %423 = vmatprep.subr.bf16.mxu1 %v587_v12  ;;  %v596_v17 = vld [vmem:[#allocation5 + $0x150] ss:$8 sps:$4 sm:$0xff]   ;;  %v575_v18 = vld [vmem:[#allocation5 + $0x20] ss:$8 sps:$4 sm:$0xff]   ;;  %v599_v19 = vld [vmem:[#allocation5 + $0x144] ss:$8 sps:$4 sm:$0xff]  }
  0x23   :  { %372 = vmatprep.subr.bf16.mxu0 %v564_v5  ;;  %v576_v20 = vld [vmem:[#allocation5 + $0x14] ss:$8 sps:$4 sm:$0xff]   ;;  %v578_v21 = vld [vmem:[#allocation5 + $0x10] ss:$8 sps:$4 sm:$0xff]   ;;  %v602_v22 = vld [vmem:[#allocation5 + $0x140] ss:$8 sps:$4 sm:$0xff]  }
  0x24   :  { %v605_v23 = vld [vmem:[#allocation5 + $0x134] ss:$8 sps:$4 sm:$0xff]   ;;  %v579_v24 = vld [vmem:[#allocation5 + $0x4] ss:$8 sps:$4 sm:$0xff]   ;;  %v608_v25 = vld [vmem:[#allocation5 + $0x130] ss:$8 sps:$4 sm:$0xff]  }
  0x25   :  { %424 = vmatpush1.bf16.msra.mxu1 %v590_v13  ;;  %v583_v26 = vld [vmem:[#allocation5] ss:$8 sps:$4 sm:$0xff]   ;;  %v611_v27 = vld [vmem:[#allocation5 + $0x124] ss:$8 sps:$4 sm:$0xff]   ;;  %v585_v28 = vld [vmem:[#allocation5 + $0xf4] ss:$8 sps:$4 sm:$0xff]  }
  0x26   :  { %373 = vmatpush1.bf16.msra.mxu0 %v566_v6  ;;  %425 = vmatprep.subr.bf16.mxu1 %v593_v16  ;;  %v614_v29 = vld [vmem:[#allocation5 + $0x120] ss:$8 sps:$4 sm:$0xff]   ;;  %v589_v30 = vld [vmem:[#allocation5 + $0xf0] ss:$8 sps:$4 sm:$0xff]   ;;  %v617_v31 = vld [vmem:[#allocation5 + $0x114] ss:$8 sps:$4 sm:$0xff]  }
  0x27   :  { %374 = vmatprep.subr.bf16.mxu0 %v567_v7  ;;  %v591_v32 = vld [vmem:[#allocation5 + $0xe4] ss:$8 sps:$4 sm:$0xff]   ;;  %v54_v33 = vld [vmem:[#allocation2 + $0x2] sm:$0xff]  ;;  %v57_v61 = vld [vmem:[#allocation2 + $0x1a] sm:$0xff]  ;;  %v119_v5 = vshrl.u32 %v118_v3, 7 }
  0x28   :  { %v620_v35 = vld [vmem:[#allocation5 + $0x110] ss:$8 sps:$4 sm:$0xff]   ;;  %v58_v36 = vpack.c.bf16 %v55_v34, %v54_v33  ;;  %v595_v37 = vld [vmem:[#allocation5 + $0xe0] ss:$8 sps:$4 sm:$0xff]   ;;  %v623_v38 = vld [vmem:[#allocation5 + $0x104] ss:$8 sps:$4 sm:$0xff]  }
  0x29   :  { %426 = vmatpush1.bf16.msra.mxu1 %v596_v17  ;;  %v597_v39 = vld [vmem:[#allocation5 + $0xd4] ss:$8 sps:$4 sm:$0xff]   ;;  %v626_v40 = vld [vmem:[#allocation5 + $0x100] ss:$8 sps:$4 sm:$0xff]   ;;  %v601_v43 = vld [vmem:[#allocation5 + $0xd0] ss:$8 sps:$4 sm:$0xff]  }
  0x2a   :  { %375 = vmatpush1.bf16.msra.mxu0 %v569_v8  ;;  %427 = vmatprep.subr.bf16.mxu1 %v599_v19  ;;  %v62_v41 = vld [vmem:[#allocation2 + $0x4] sm:$0xff]  ;;  %v63_v42 = vld [vmem:[#allocation2 + $0xc] sm:$0xff]  ;;  %v64_v48 = vld [vmem:[#allocation2 + $0x14] sm:$0xff]  ;;  %v120_v7 = vsub.s32 0, %v119_v5  ;;  %v124_v9 = vsub.s32 1, %v119_v5 }
  0x2b   :  { %376 = vmatprep.subr.bf16.mxu0 %v570_v11  ;;  %400 = vmatprep.mubr.bf16.mxu0 %v58_v36  ;;  %v603_v44 = vld [vmem:[#allocation5 + $0xc4] ss:$8 sps:$4 sm:$0xff]   ;;  %v66_v45 = vpack.c.bf16 %v63_v42, %v62_v41  ;;  %v607_v46 = vld [vmem:[#allocation5 + $0xc0] ss:$8 sps:$4 sm:$0xff]   ;;  %v609_v47 = vld [vmem:[#allocation5 + $0xb4] ss:$8 sps:$4 sm:$0xff]  }
  0x2c   :  { %v65_v49 = vld [vmem:[#allocation2 + $0x1c] sm:$0xff]  ;;  %v615_v51 = vld [vmem:[#allocation5 + $0xa4] ss:$8 sps:$4 sm:$0xff]   ;;  %v619_v53 = vld [vmem:[#allocation5 + $0xa0] ss:$8 sps:$4 sm:$0xff]  }
  0x2d   :  { %428 = vmatpush1.bf16.msra.mxu1 %v602_v22  ;;  %v613_v50 = vld [vmem:[#allocation5 + $0xb0] ss:$8 sps:$4 sm:$0xff]   ;;  %v67_v52 = vpack.c.bf16 %v65_v49, %v64_v48  ;;  %v621_v54 = vld [vmem:[#allocation5 + $0x94] ss:$8 sps:$4 sm:$0xff]   ;;  %v627_v56 = vld [vmem:[#allocation5 + $0x84] ss:$8 sps:$4 sm:$0xff]  }
  0x2e   :  { %377 = vmatpush1.bf16.msra.mxu0 %v572_v14  ;;  %429 = vmatprep.subr.bf16.mxu1 %v605_v23  ;;  %v625_v55 = vld [vmem:[#allocation5 + $0x90] ss:$8 sps:$4 sm:$0xff]   ;;  %v629_v57 = vld [vmem:[#allocation5 + $0x80] ss:$8 sps:$4 sm:$0xff]  }
  0x2f   :  { %378 = vmatprep.subr.bf16.mxu0 %v573_v15  ;;  %v46_v58 = vld [vmem:[#allocation2] sm:$0xff]  ;;  %v47_v59 = vld [vmem:[#allocation2 + $0x8] sm:$0xff]  ;;  %v56_v60 = vld [vmem:[#allocation2 + $0x12] sm:$0xff] }
  0x30   :  { %v50_v62 = vpack.c.bf16 %v47_v59, %v46_v58  ;;  %v59_v63 = vpack.c.bf16 %v57_v61, %v56_v60  ;;  %v49_v1 = vld [vmem:[#allocation2 + $0x18] sm:$0xff]  ;;  %v116_v8 = vld [vmem:[%s740_s2] sm:$0x3]  ;;  %s701_s2 = smov [#allocation7]  }
  0x31   :  { %430 = vmatpush1.bf16.msra.mxu1 %v608_v25  ;;  %v121_v11 = vrot.slane %v116_v8, %v120_v7  ;;  %v125_v12 = vrot.slane %v116_v8, %v124_v9  ;;  %s487_s24 = sshll.u32 %s701_s2, 4  ;;  %s488_s24 = int_to_ptr.vmem [resolvable:$true] %s487_s24 }
  0x32   :  { %379 = vmatpush1.bf16.msra.mxu0 %v575_v18  ;;  %431 = vmatprep.subr.bf16.mxu1 %v611_v27  ;;  %s670_s25 = scalar_lea.vmem %s488_s24, 1024  ;;  %p675_p11 = scmp.lt.s32.totalorder %s488_s24, %s488_s24 }
  0x33   :  { %380 = vmatprep.subr.bf16.mxu0 %v576_v20  ;;  %p671_p10 = scmp.ne.s32.totalorder %s488_s24, %s670_s25  ;;  %p676_p12 = scmp.lt.s32.totalorder %s670_s25, %s670_s25 }
  0x35   :  { %432 = vmatpush1.bf16.msra.mxu1 %v614_v29  ;;  %p677_p13 = por %p676_p12, %p675_p11 }
  0x36   :  { %381 = vmatpush1.bf16.msra.mxu0 %v578_v21  ;;  %433 = vmatprep.subr.bf16.mxu1 %v617_v31 }
  0x37   :  { %382 = vmatprep.subr.bf16.mxu0 %v579_v24  ;;  %p678_p0 = pnand %p677_p13, %p671_p10 }
  0x39   :  { %434 = vmatpush1.bf16.msra.mxu1 %v620_v35 }
  0x3a   :  { %383 = vmatpush1.bf16.msra.mxu0 %v583_v26  ;;  %435 = vmatprep.subr.bf16.mxu1 %v623_v38 }
  0x3b   :  { %384 = vmatprep.subr.bf16.mxu0 %v585_v28 }
  0x3d   :  { %436 = vmatpush1.bf16.msra.mxu1 %v626_v40 }
  0x3e   :  { %385 = vmatpush2.bf16.msra.mxu0 %v589_v30 }
  0x3f   :  { %386 = vmatprep.subr.bf16.mxu0 %v591_v32 }
  0x40   :  { %454 = vmatmul.mubr.bf16.vlgmr.msra.gmra.mxu1 %v66_v45 }
  0x41   :  { %463 = vmatprep.mubr.bf16.mxu1 %v700_v0  ;;  %v48_v0 = vld [vmem:[#allocation2 + $0x10] sm:$0xff] }
  0x42   :  { %387 = vmatpush2.bf16.msra.mxu0 %v595_v37  ;;  %v51_v2 = vpack.c.bf16 %v49_v1, %v48_v0 }
  0x43   :  { %388 = vmatprep.subr.bf16.mxu0 %v597_v39 }
  0x46   :  { %389 = vmatpush2.bf16.msra.mxu0 %v601_v43 }
  0x47   :  { %390 = vmatprep.subr.bf16.mxu0 %v603_v44 }
  0x48   :  { %464 = vmatmul.mubr.bf16.gmra.mxu1 %v67_v52 }
  0x4a   :  { %391 = vmatpush2.bf16.msra.mxu0 %v607_v46 }
  0x4b   :  { %392 = vmatprep.subr.bf16.mxu0 %v609_v47 }
  0x4e   :  { %393 = vmatpush2.bf16.msra.mxu0 %v613_v50 }
  0x4f   :  { %394 = vmatprep.subr.bf16.mxu0 %v615_v51 }
  0x52   :  { %395 = vmatpush2.bf16.msra.mxu0 %v619_v53 }
  0x53   :  { %396 = vmatprep.subr.bf16.mxu0 %v621_v54 }
  0x56   :  { %397 = vmatpush2.bf16.msra.mxu0 %v625_v55 }
  0x57   :  { %398 = vmatprep.subr.bf16.mxu0 %v627_v56 }
  0x5a   :  { %399 = vmatpush2.bf16.msra.mxu0 %v629_v57 }
  0x5d   :  { %401 = vmatmul.mubr.bf16.vlgmr.msra.gmra.mxu0 %v50_v62 }
  0x5e   :  { %410 = vmatprep.mubr.bf16.mxu0 %v59_v63 }
  0x65   :  { %411 = vmatmul.mubr.bf16.gmra.mxu0 %v51_v2 }
 0x100   :  { %v455_v4 = vpop.f32.mrf.mxu1 }
 0x102   :  { %v457_v6 = vpop.f32.mrf.mxu1 }
 0x104   :  { %v459_v10 = vpop.f32.mrf.mxu1 }
 0x106   :  { %v461_v14 = vpop.f32.mrf.mxu1 }
 0x108   :  { %v465_v20 = vpop.f32.mrf.mxu1 }
 0x10a   :  { %v467_v26 = vpop.f32.mrf.mxu1 }
 0x10c   :  { %v469_v33 = vpop.f32.mrf.mxu1 }
 0x10e   :  { %v471_v40 = vpop.f32.mrf.mxu1 }
 0x11d   :  { %v402_v13 = vpop.f32.mrf.mxu0 }
 0x11e   :  { %v403_v15 = vadd.f32 %v402_v13, %v121_v11 }
 0x11f   :  { %v404_v16 = vpop.f32.mrf.mxu0 }
 0x120   :  { %v456_v17 = vadd.f32 %v455_v4, %v403_v15  ;;  %v405_v18 = vadd.f32 %v404_v16, %v125_v12 }
 0x121   :  { %v406_v19 = vpop.f32.mrf.mxu0 }
 0x122   :  { %474 = vst [vmem:[#allocation7] sm:$0xff] %v456_v17  ;;  %v458_v21 = vadd.f32 %v457_v6, %v405_v18  ;;  %v407_v22 = vadd.f32 %v406_v19, %v121_v11 }
 0x123   :  { %v408_v23 = vpop.f32.mrf.mxu0 }
 0x124   :  { %475 = vst [vmem:[#allocation7 + $0x8] sm:$0xff] %v458_v21  ;;  %v460_v24 = vadd.f32 %v459_v10, %v407_v22  ;;  %v409_v25 = vadd.f32 %v408_v23, %v125_v12 }
 0x125   :  { %v412_v27 = vpop.f32.mrf.mxu0 }
 0x126   :  { %476 = vst [vmem:[#allocation7 + $0x10] sm:$0xff] %v460_v24  ;;  %v462_v28 = vadd.f32 %v461_v14, %v409_v25  ;;  %v413_v29 = vadd.f32 %v412_v27, %v121_v11 }
 0x127   :  { %v414_v30 = vpop.f32.mrf.mxu0 }
 0x128   :  { %477 = vst [vmem:[#allocation7 + $0x18] sm:$0xff] %v462_v28  ;;  %v466_v31 = vadd.f32 %v465_v20, %v413_v29  ;;  %v415_v32 = vadd.f32 %v414_v30, %v125_v12 }
 0x129   :  { %v416_v34 = vpop.f32.mrf.mxu0 }
 0x12a   :  { %478 = vst [vmem:[#allocation7 + $0x20] sm:$0xff] %v466_v31  ;;  %v468_v35 = vadd.f32 %v467_v26, %v415_v32  ;;  %v417_v36 = vadd.f32 %v416_v34, %v121_v11 }
 0x12b   :  { %v418_v37 = vpop.f32.mrf.mxu0 }
 0x12c   :  { %479 = vst [vmem:[#allocation7 + $0x28] sm:$0xff] %v468_v35  ;;  %v470_v38 = vadd.f32 %v469_v33, %v417_v36  ;;  %v419_v39 = vadd.f32 %v418_v37, %v125_v12 }
 0x12e   :  { %480 = vst [vmem:[#allocation7 + $0x30] sm:$0xff] %v470_v38  ;;  %v472_v41 = vadd.f32 %v471_v40, %v419_v39 }
 0x130   :  { %481 = vst [vmem:[#allocation7 + $0x38] sm:$0xff] %v472_v41 }
 0x131   :  { %681 = shalt.err (!%p678_p0)
}
 0x132   :  { %s702_s26 = smov 256   ;;  %s703_s27 = smov 16  }
 0x133   :  { %493 = dma.vmem_to_hbm [thread:$0]  %s488_s24, 1024, %s741_s3, [#allocation4], %s702_s26, %s702_s26, %s703_s27  }
 0x134   :  { %694 = dma.done.wait [#allocation4], 1024  }
 0x135   :  { %695 = vsyncadd [#allocation4], 4294966272 }
 0x136   :  { %497 = vsyncpa [#allocation3], 1 }
 0x137   :  { %498 = vsyncpa [#allocation6], 1 }
 0x138   :  { %499 = vsyncpa [#allocation4], 1 }

</bundles_post_ra>
